<compile_context>
chip_gen: v6e
topology: v6e:2x2x1
jax: 0.10.0
libtpu: 0.0.40
codegen_flags: <defaults>
</compile_context>

<pallas_src>
import jax
import jax.numpy as jnp
from jax import lax
from jax.experimental import pallas as pl
from jax.experimental.pallas import tpu as pltpu


def _embed_kernel(rows_ref, w_ref, table_ref, out_ref):
    # rows_ref : (1, tm, Kp)   bf16 -- patch rows (row 0 of each batch = 0)
    # w_ref    : (Kp, tn)      bf16 -- patch projection (block idx constant in b)
    # table_ref: (tm, tn)      bf16 -- pos_emb (+conv bias); row 0 = cls + pos[0]
    # out_ref  : (1, tm, tn)
    acc = jnp.dot(rows_ref[0], w_ref[...], preferred_element_type=jnp.float32)
    out_ref[0] = (acc + table_ref[...].astype(jnp.float32)).astype(out_ref.dtype)


def _pick_row_tile(seq_len):
    # MXU-aligned row tiles.  512 amortizes the ~0.35us per-grid-step overhead
    # on v7x/v6e; on v5e the kernel is already DMA-dominated at 128-256 and the
    # larger tile is harmless (per-step VMEM stays in the single-digit-MB range).
    for tm in (512, 256, 128):
        if seq_len >= tm:
            return tm
    return seq_len           # tiny sequences: full-dim escape for the BlockSpec


def patch_embed_pallas(rows, w_kh, table, out_dtype):
    """rows:  (B, S, Kp) bf16   (S = n_patches + 1; row 0 per batch is zeros)
       w_kh:  (Kp, hidden) bf16
       table: (S, hidden)  bf16 (row 0 = cls + pos[0], rows 1.. = pos + bias)
       Returns (B, S, hidden) in `out_dtype`."""
    B, S, Kp = rows.shape
    hidden = w_kh.shape[1]
    tm = _pick_row_tile(S)
    n_seq = pl.cdiv(S, tm)

    # Small-batch / small-grid path: tile the hidden dim in 256-wide blocks so
    # there are enough grid steps to fill the pipeline and occupy both v7x
    # TensorCores.  At larger batch keep full-hidden (lane-dense) output blocks
    # so the rows are not re-streamed once per hidden tile.
    if B * n_seq < 8 and hidden > 256 and hidden % 256 == 0:
        tn = 256
    else:
        tn = hidden
    n_hid = hidden // tn

    # Grid order (seq, batch, hidden): as the batch index varies, the weight
    # block index (0, n) and the table block index (j, n) are unchanged, so
    # Pallas skips their re-DMA -- the table is read once, not B times.
    grid = (n_seq, B, n_hid)

    # NOTE: when n_hid == 1 the weight block index is constant across the whole
    # grid; pipeline_mode=pl.Buffered(1) on its BlockSpec would halve its
    # resident VMEM.  Left at default double-buffering to keep lowering
    # conservative (only matters for VMEM headroom at ViT-H scale on v7x).
    return pl.pallas_call(
        _embed_kernel,
        out_shape=jax.ShapeDtypeStruct((B, S, hidden), out_dtype),
        grid_spec=pltpu.PrefetchScalarGridSpec(
            num_scalar_prefetch=0,
            grid=grid,
            in_specs=[
                pl.BlockSpec((1, tm, Kp), lambda j, b, n: (b, j, 0)),
                pl.BlockSpec((Kp, tn), lambda j, b, n: (0, n)),
                pl.BlockSpec((tm, tn), lambda j, b, n: (j, n)),
            ],
            out_specs=pl.BlockSpec((1, tm, tn), lambda j, b, n: (b, j, n)),
        ),
        compiler_params=pltpu.CompilerParams(
            dimension_semantics=("parallel", "parallel", "parallel")),
    )(rows, w_kh, table)


def _prepare_inputs(x, conv_w, conv_b, cls_token, pos_emb, patch_size):
    """Builds kernel operands: patch rows (bf16, zero cls row prepended, K
    zero-padded to a multiple of 128), projection weight (Kp, hidden) bf16,
    and the folded cls/pos/bias table (S, hidden) bf16."""
    B, C, H, W = x.shape
    ph, pw = patch_size
    gh, gw = H // ph, W // pw
    n_patches = gh * gw
    hidden = conv_w.shape[0]
    K = C * ph * pw
    Kp = -(-K // 128) * 128      # lane/MXU-aligned contraction dim

    # Patch extraction (NCHW -> (B, n_patches, C*ph*pw), order (c, kh, kw) to
    # match Conv2d's weight flatten), done in bf16 to halve the relayout's HBM
    # traffic.  This relayout is inherent to the NCHW input contract.
    # TODO(synk): fuse the im2col into the kernel (BlockSpec over image row
    # bands + in-kernel rearrange) so `rows` never round-trips HBM.
    x_bf16 = x.astype(jnp.bfloat16)
    patches = x_bf16.reshape(B, C, gh, ph, gw, pw)
    patches = patches.transpose(0, 2, 4, 1, 3, 5)          # (B, gh, gw, C, ph, pw)
    patches = patches.reshape(B, n_patches, K)

    # Single pad op: zero cls row at the front of the sequence (its matmul
    # contributes 0; table row 0 supplies cls + pos[0]) and zero-pad K -> Kp
    # (zero columns contribute 0 to the dot).  Expected to fuse into the
    # relayout copy-fusion.
    # TODO(synk): if HLO shows the pad as a separate pass, switch to a
    # dynamic_update_slice of the cls row on the output instead.
    rows = jnp.pad(patches, ((0, 0), (1, 0), (0, Kp - K)))  # (B, S, Kp) bf16

    # Conv weight (hidden, C, ph, pw) -> (Kp, hidden), bf16 for the MXU.
    w_kh = conv_w.reshape(hidden, K).T.astype(jnp.bfloat16)
    if Kp != K:
        w_kh = jnp.pad(w_kh, ((0, Kp - K), (0, 0)))

    # Fold conv bias into the positional table; row 0 is the cls row.  Stored
    # bf16 (half the read stream); upcast to f32 inside the kernel for the add.
    cls_row = (cls_token[0, 0, :] + pos_emb[0, 0, :])[None, :]     # (1, hidden)
    patch_rows = pos_emb[0, 1:, :] + conv_b[None, :]               # (n_patches, hidden)
    table = jnp.concatenate([cls_row, patch_rows], axis=0).astype(jnp.bfloat16)
    return rows, w_kh, table


def embeddings_forward(x, conv_w, conv_b, cls_token, pos_emb, patch_size,
                       out_dtype=None):
    """Full Embeddings.forward (non-hybrid path; dropout == identity at
    inference).

    x:        (B, C, H, W)   NCHW, matching PyTorch
    conv_w:   (hidden, C, ph, pw)
    conv_b:   (hidden,)
    cls_token:(1, 1, hidden)
    pos_emb:  (1, n_patches + 1, hidden)
    out_dtype: default x.dtype (module contract); pass jnp.bfloat16 when the
               downstream encoder is bf16 to halve the output write stream.
    returns   (B, n_patches + 1, hidden)
    """
    # TODO(synk): hybrid (ResNet backbone) path of the module not implemented.
    # TODO(synk): training-mode dropout masking not implemented (identity here).
    rows, w_kh, table = _prepare_inputs(x, conv_w, conv_b, cls_token, pos_emb,
                                        patch_size)
    return patch_embed_pallas(
        rows, w_kh, table,
        out_dtype=x.dtype if out_dtype is None else out_dtype)


# ----------------------------- references / tests ---------------------------

def _matched_reference(rows, w_kh, table, out_dtype):
    # Mirrors the kernel arithmetic exactly: bf16 MXU inputs, f32 accumulation,
    # f32 table add, final cast.
    acc = jnp.einsum("bsk,kh->bsh", rows, w_kh,
                     preferred_element_type=jnp.float32)
    return (acc + table.astype(jnp.float32)[None]).astype(out_dtype)


def _reference_forward(x, conv_w, conv_b, cls_token, pos_emb, patch_size):
    # Pure-JAX f32 reference mirroring the PyTorch forward.
    B = x.shape[0]
    hidden = conv_w.shape[0]
    y = lax.conv_general_dilated(
        x, conv_w, window_strides=patch_size, padding="VALID",
        dimension_numbers=("NCHW", "OIHW", "NCHW"))
    y = y + conv_b.reshape(1, hidden, 1, 1)
    y = y.reshape(B, hidden, -1)                 # flatten(2)
    y = jnp.swapaxes(y, -1, -2)                  # transpose(-1, -2)
    cls = jnp.broadcast_to(cls_token, (B, 1, hidden))
    y = jnp.concatenate([cls, y], axis=1)
    return y + pos_emb


def _run_case(seed, B, C, H, W, patch_size, hidden):
    ph, pw = patch_size
    n_patches = (H // ph) * (W // pw)
    key = jax.random.PRNGKey(seed)
    kx, kw, kb, kc, kp = jax.random.split(key, 5)

    x = jax.random.normal(kx, (B, C, H, W), dtype=jnp.float32)
    conv_w = jax.random.normal(kw, (hidden, C, ph, pw), dtype=jnp.float32) * 0.02
    conv_b = jax.random.normal(kb, (hidden,), dtype=jnp.float32) * 0.02
    # PyTorch inits these to zeros; small deterministic randoms keep the test
    # non-trivial.
    cls_token = jax.random.normal(kc, (1, 1, hidden), dtype=jnp.float32) * 0.02
    pos_emb = jax.random.normal(kp, (1, n_patches + 1, hidden),
                                dtype=jnp.float32) * 0.02

    out = embeddings_forward(x, conv_w, conv_b, cls_token, pos_emb, patch_size)
    out = jax.block_until_ready(out)
    assert out.shape == (B, n_patches + 1, hidden), out.shape

    # Tight check: reference with identical (bf16-in / f32-accum) arithmetic.
    rows, w_kh, table = _prepare_inputs(x, conv_w, conv_b, cls_token, pos_emb,
                                        patch_size)
    ref_m = _matched_reference(rows, w_kh, table, x.dtype)
    err_m = float(jnp.max(jnp.abs(out - ref_m)))
    assert jnp.allclose(out, ref_m, atol=1e-4, rtol=1e-4), err_m

    # Loose sanity check vs. the full-f32 PyTorch-style forward (bf16 inputs).
    ref_f = _reference_forward(x, conv_w, conv_b, cls_token, pos_emb, patch_size)
    err_f = float(jnp.max(jnp.abs(out - ref_f.astype(out.dtype))))
    assert jnp.allclose(out, ref_f, atol=3e-2, rtol=3e-2), err_f


if __name__ == "__main__":
    # Small config consistent with the module: img 16x16, patch 4x4, C=4,
    # hidden 32 -> n_patches = 16, seq = 17.  Exercises the K -> 128 zero-pad.
    _run_case(0, B=2, C=4, H=16, W=16, patch_size=(4, 4), hidden=32)
    # Small-batch / wide-hidden case -> exercises the 256-wide hidden tiling.
    _run_case(1, B=1, C=3, H=32, W=32, patch_size=(16, 16), hidden=512)
    # Sequence length 197 not a multiple of the 128 row tile -> exercises the
    # masked partial last tile (review correctness concern).
    _run_case(2, B=1, C=1, H=224, W=224, patch_size=(16, 16), hidden=128)
    print("KERNEL_OK")
</pallas_src>

<mosaic_0001>
module attributes {stable_mosaic.version = 11 : i64} {
  func.func @_embed_kernel(%arg0: i32, %arg1: i32, %arg2: i32, %arg3: memref<1x17x128xbf16, #tpu.memory_space<vmem>>, %arg4: memref<128x32xbf16, #tpu.memory_space<vmem>>, %arg5: memref<17x32xbf16, #tpu.memory_space<vmem>>, %arg6: memref<1x17x32xf32, #tpu.memory_space<vmem>>) attributes {dimension_semantics = [#tpu.dimension_semantics<parallel>, #tpu.dimension_semantics<parallel>, #tpu.dimension_semantics<parallel>], iteration_bounds = array<i64: 1, 2, 1>, scalar_prefetch = 0 : i64, scratch_operands = 0 : i64, tpu.core_type = #tpu.core_type<tc>, window_params = [{transform_indices = @transform_0, window_bounds = array<i64: 1, 17, 128>}, {transform_indices = @transform_1, window_bounds = array<i64: 128, 32>}, {transform_indices = @transform_2, window_bounds = array<i64: 17, 32>}, {transform_indices = @transform_3, window_bounds = array<i64: 1, 17, 32>}]} {
    %c0 = arith.constant 0 : index
    %c0_0 = arith.constant 0 : index
    %c0_1 = arith.constant 0 : index
    %0 = vector.load %arg3[%c0, %c0_0, %c0_1] : memref<1x17x128xbf16, #tpu.memory_space<vmem>>, vector<1x17x128xbf16>
    %1 = vector.shape_cast %0 : vector<1x17x128xbf16> to vector<17x128xbf16>
    %c0_2 = arith.constant 0 : index
    %c0_3 = arith.constant 0 : index
    %2 = vector.load %arg4[%c0_2, %c0_3] : memref<128x32xbf16, #tpu.memory_space<vmem>>, vector<128x32xbf16>
    %cst = arith.constant dense<0.000000e+00> : vector<17x32xf32>
    %3 = tpu.matmul %1, %2, %cst {dimension_numbers = #tpu.dot_dimension_numbers<[1], [0], [0], [1], [0, 0, 1, 1], [], []>} : vector<17x128xbf16>, vector<128x32xbf16>, vector<17x32xf32> -> vector<17x32xf32>
    %c0_4 = arith.constant 0 : index
    %c0_5 = arith.constant 0 : index
    %4 = vector.load %arg5[%c0_4, %c0_5] : memref<17x32xbf16, #tpu.memory_space<vmem>>, vector<17x32xbf16>
    %5 = arith.extf %4 : vector<17x32xbf16> to vector<17x32xf32>
    %6 = arith.addf %3, %5 : vector<17x32xf32>
    %c0_6 = arith.constant 0 : index
    %c0_7 = arith.constant 0 : index
    %c0_8 = arith.constant 0 : index
    %7 = vector.load %arg6[%c0_6, %c0_7, %c0_8] : memref<1x17x32xf32, #tpu.memory_space<vmem>>, vector<1x17x32xf32>
    %8 = vector.shape_cast %7 : vector<1x17x32xf32> to vector<17x32xf32>
    %9 = vector.shape_cast %6 : vector<17x32xf32> to vector<1x17x32xf32>
    tpu.vector_store %arg6[%c0_6, %c0_7, %c0_8], %9 {strides = array<i32>} : memref<1x17x32xf32, #tpu.memory_space<vmem>>, vector<1x17x32xf32>,
    return
  }
  func.func @transform_0(%arg0: i32, %arg1: i32, %arg2: i32) -> (i32, i32, i32) {
    %c0_i32 = arith.constant 0 : i32
    %c0_i32_0 = arith.constant 0 : i32
    return %arg1, %arg0, %c0_i32 : i32, i32, i32
  }
  func.func @transform_1(%arg0: i32, %arg1: i32, %arg2: i32) -> (i32, i32) {
    %c0_i32 = arith.constant 0 : i32
    %c0_i32_0 = arith.constant 0 : i32
    return %c0_i32, %arg2 : i32, i32
  }
  func.func @transform_2(%arg0: i32, %arg1: i32, %arg2: i32) -> (i32, i32) {
    %c0_i32 = arith.constant 0 : i32
    return %arg0, %arg2 : i32, i32
  }
  func.func @transform_3(%arg0: i32, %arg1: i32, %arg2: i32) -> (i32, i32, i32) {
    %c0_i32 = arith.constant 0 : i32
    return %arg1, %arg0, %arg2 : i32, i32, i32
  }
}

</mosaic_0001>

<bundles_post_ra>
// kernel: tpu_custom_call.1
= control target key start
LH: loop header
LB: loop body
LE: loop exit
PB: predicated region body
PF: predicated region fallthrough
CT: control target
= control target key end

     0   :  { %s680_s12 = smov 0   ;;  %s682_s13 = smov 0   ;;  %s747_s0 = inlined_call_operand.vmem [shape: bf16[2,17,128], index: 0, kind: input, shape index: {}]   ;;  %s748_s1 = inlined_call_operand.vmem [shape: bf16[128,32], index: 1, kind: input, shape index: {}]   ;;  %s749_s2 = inlined_call_operand.vmem [shape: bf16[17,32], index: 2, kind: input, shape index: {}]   ;;  %s750_s3 = inlined_call_operand.vmem [shape: f32[2,17,32], index: 3, kind: output, shape index: {}]  }
   0x1   :  { %s684_s14 = smov 0  }
   0x2 LB: > { %s28_s15 = sadd.s32 1, %s654_s13  ;;  %p551_p0 = scmp.ge.s32.totalorder %s658_s14, 1  ;;  %s658_s14 = sphi %s684_s14, %s13_s14   ;;  %s654_s13 = sphi %s682_s13, %s752_s13   ;;  %s650_s12 = sphi %s680_s12, %s751_s12  }
   0x3   : > { %p30_p1 = scmp.ge.s32.totalorder %s28_s15, 2  ;;  %p192_p2 = scmp.lt.s32.totalorder %s658_s14, 3 }
   0x5   : > { %s754_s15 = smov (%p30_p1, %s28_s15), 0  ;;  %p193_p3 = pnand %p551_p0, %p192_p2 }
   0x6   : > { %p240_p4 = scmp.lt.s32.totalorder (!%p193_p3), %s650_s12, 1 }
   0x7   : > { %196 = sbr.rel (%p193_p3) target bundleno = 247 (0xf7), region = 32 }
   0xc   : > { %v626_v0 = vld [vmem:[%s748_s1 + $0x38] sm:$0xff]   ;;  %v627_v1 = vld [vmem:[%s748_s1 + $0x30] sm:$0xff]   ;;  %s756_s12 = smov (!%p240_p4, %s650_s12), 1  ;;  %v628_v2 = vld [vmem:[%s748_s1 + $0x28] sm:$0xff]   ;;  %vm410_vm0 = vcmask 253952   ;;  %vm407_vm1 = vcmask 261120  }
   0xd   : > { %580 = vmatprep.subr.bf16.mxu0 %v626_v0  ;;  %s600_s22 = smul.u32 12, %s756_s12  ;;  %v629_v3 = vld [vmem:[%s748_s1 + $0x20] sm:$0xff]   ;;  %v630_v5 = vld [vmem:[%s748_s1 + $0x18] sm:$0xff]   ;;  %v631_v6 = vld [vmem:[%s748_s1 + $0x10] sm:$0xff]  }
   0xe   : > { %581 = vmatpush3.bf16.msra.mxu0 %v626_v0  ;;  %v632_v7 = vld [vmem:[%s748_s1 + $0x8] sm:$0xff]   ;;  %v633_v8 = vld [vmem:[%s748_s1] sm:$0xff]   ;;  %s601_s11 = smul.u32 24, %s756_s12 }
   0xf   : > { %582 = vmatprep.subr.bf16.mxu0 %v627_v1  ;;  %s247_s25 = scalar_lea.vmem %s747_s0, %s600_s22  ;;  %v297_v10 = vld [vmem:[%s749_s2 + $0x8] sm:$0x1]  ;;  %v567_v11 = vld [vmem:[%s749_s2] sm:$0xff]  }
  0x10   : > { %v634_v4 = vld [vmem:[%s247_s25] sm:$0xff]   ;;  %v635_v9 = vld [vmem:[%s247_s25 + $0x8] ss:$0 sps:$4 sm:$0x11]   ;;  %v300_v12 = vunpack.c.l.bf16 %v297_v10  ;;  %v568_v13 = vunpack.c.l.bf16 %v567_v11  ;;  %s273_s20 = scalar_lea.vmem %s750_s3, %s601_s11  ;;  %v569_v18 = vunpack.c.h.bf16 %v567_v11 }
  0x11   : > { %596 = vmatprep.mubr.bf16.mxu0 %v634_v4 }
  0x12   : > { %583 = vmatpush3.bf16.msra.mxu0 %v627_v1 }
  0x13   : > { %584 = vmatprep.subr.bf16.mxu0 %v628_v2 }
  0x16   : > { %585 = vmatpush3.bf16.msra.mxu0 %v628_v2 }
  0x17   : > { %586 = vmatprep.subr.bf16.mxu0 %v629_v3 }
  0x1a   : > { %587 = vmatpush3.bf16.msra.mxu0 %v629_v3 }
  0x1b   : > { %588 = vmatprep.subr.bf16.mxu0 %v630_v5 }
  0x1e   : > { %589 = vmatpush3.bf16.msra.mxu0 %v630_v5 }
  0x1f   : > { %590 = vmatprep.subr.bf16.mxu0 %v631_v6 }
  0x22   : > { %591 = vmatpush3.bf16.msra.mxu0 %v631_v6 }
  0x23   : > { %592 = vmatprep.subr.bf16.mxu0 %v632_v7 }
  0x26   : > { %593 = vmatpush3.bf16.msra.mxu0 %v632_v7 }
  0x27   : > { %594 = vmatprep.subr.bf16.mxu0 %v633_v8 }
  0x2a   : > { %595 = vmatpush3.bf16.msra.mxu0 %v633_v8 }
  0x2d   : > { %597 = vmatmul.mubr.bf16.vlgmr.msra.gmra.mxu0 %v635_v9 }
  0xed   : > { %v598_v14 = vpop.f32.mrf.mxu0 }
  0xee   : > { %v402_v15 = vadd.f32 %v598_v14, %v300_v12 }
  0xef   : > { %v393_v16 = vpop.f32.mrf.mxu0 }
  0xf0   : > { %411 = vst.msk [vmem:[%s273_s20 + $0x10] sm:$0x1] %vm410_vm0, %v402_v15  ;;  %v394_v17 = vadd.f32 %v568_v13, %v393_v16 }
  0xf1   : > { %v599_v19 = vpop.f32.mrf.mxu0 }
  0xf2   : > { %408 = vst.msk [vmem:[%s273_s20] sm:$0xff] %vm407_vm1, %v394_v17 }
  0xf3   : > { %v396_v20 = vpop.f32.mrf.mxu0 }
  0xf4   : > { %v397_v21 = vadd.f32 %v569_v18, %v396_v20 }
  0xf6   : > { %409 = vst.msk [vmem:[%s273_s20 + $0x8] sm:$0xff] %vm407_vm1, %v397_v21 }
  0xf7 PF: > { %s13_s14 = sadd.s32 1, %s658_s14   ;;  %s751_s12 = smov %s654_s13 }
  0xf8   : > { %p10_p5 = scmp.ge.s32.totalorder %s13_s14, 4   ;;  %s752_s13 = smov %s754_s15 }
  0xfa   :  { %12 = sbr.rel (!%p10_p5) target bundleno = 2 (0x2), region = 68 }

</bundles_post_ra>
